<compile_context>
chip_gen: v5e
topology: v5e:2x2
jax: 0.10.0
libtpu: 0.0.40
codegen_flags: <defaults>
</compile_context>

<pallas_src>
import jax
import jax.numpy as jnp
from jax.experimental import pallas as pl
from jax.experimental.pallas import tpu as pltpu


def _round_up(x, m):
    return ((x + m - 1) // m) * m


# Per-step activation footprint is ~tile_b * 2 KiB (x double-buffered + h1 + h2 in f32);
# 8192 rows ≈ 10 MiB, comfortably under the scoped-VMEM default on v5e/v6e/v7x.
_VMEM_ROW_CAP = 8192


def _tpu_hw():
    """(tensorcores per chip, MXU row alignment) from the device kind string."""
    try:
        kind = jax.devices()[0].device_kind.lower()
    except Exception:
        return 1, 256
    compact = kind.replace(" ", "")
    if "v7" in compact or "tpu7" in compact:
        return 2, 256               # v7x: 2 TensorCores/chip, 2x256 MXU
    if "v5" in compact and ("lite" in compact or "5e" in compact):
        return 1, 128               # v5e: 1 TC, 4x128 MXU -> 128-row multiples suffice
    return 1, 256                   # v6e / unknown: safe default


def _choose_tile_b(B, num_tc, align):
    """Batch-tile selection: one big block when possible, 2 parallel steps on v7x."""
    if B <= _VMEM_ROW_CAP and (num_tc <= 1 or B <= 2 * align):
        return B                    # single grid step, no pipeline overhead, no padding
    per_step = -(-B // num_tc)      # ceil(B / num_tc): one step per TensorCore on v7x
    return min(_round_up(per_step, align), _VMEM_ROW_CAP)


# ----------------------------- Pallas kernel --------------------------------
def _critic_kernel(x_ref, w1_ref, b1_ref, w2_ref, b2_ref, w3_ref, b3_ref, o_ref):
    # x_ref : (TB, D_in)    w1_ref: (D_in, H)   b1_ref: (1, H)
    # w2_ref: (H, H)        b2_ref: (1, H)
    # w3_ref: (1, H)  (row form of the (H, 1) weight)   b3_ref: SMEM (1,)
    # o_ref : (1, TB)  lane-major output block
    x = x_ref[...]
    h1 = jnp.tanh(
        jnp.dot(x, w1_ref[...], preferred_element_type=jnp.float32) + b1_ref[...]
    )                                                                  # (TB, H)
    h2 = jnp.tanh(
        jnp.dot(h1, w2_ref[...], preferred_element_type=jnp.float32) + b2_ref[...]
    )                                                                  # (TB, H)
    # Final Linear(H, 1): VPU multiply + lane reduce, stored lane-major (1, TB);
    # the squeeze(-1) of the reference module happens in the wrapper slice.
    v = jnp.sum(h2 * w3_ref[...], axis=-1) + b3_ref[0]                 # (TB,)
    o_ref[...] = v[None, :].astype(o_ref.dtype)                        # (1, TB)


# ------------------------------- wrapper -------------------------------------
def critic_forward(state, w1, b1, w2, b2, w3, b3, *, tile_b=None):
    """state: (B, D_in) f32 -> (B,) f32  (matches Critic.forward's value.squeeze(-1))."""
    B, D_in = state.shape
    H = w1.shape[1]

    num_tc, align = _tpu_hw()
    if tile_b is None:
        tile_b = _choose_tile_b(B, num_tc, align)
    else:
        tile_b = max(int(tile_b), 1)
        if tile_b < B:
            tile_b = _round_up(tile_b, 8)      # sublane-legal when the batch axis is blocked
    if tile_b >= B:
        tile_b = B                             # whole batch in one grid step, exact dims

    B_pad = _round_up(B, tile_b)
    state_p = state if B_pad == B else jnp.pad(state, ((0, B_pad - B), (0, 0)))

    w3_row = w3.reshape(1, H)                  # row form, broadcasts against (TB, H)
    b3_s = b3.reshape(-1).astype(jnp.float32)  # (1,) scalar -> SMEM

    grid = (B_pad // tile_b,)

    out = pl.pallas_call(
        _critic_kernel,
        out_shape=jax.ShapeDtypeStruct((1, B_pad), jnp.float32),
        grid_spec=pltpu.PrefetchScalarGridSpec(
            num_scalar_prefetch=0,
            grid=grid,
            in_specs=[
                pl.BlockSpec((tile_b, D_in), lambda i: (i, 0)),     # state tile (unpadded feature dim)
                pl.BlockSpec((D_in, H), lambda i: (0, 0)),          # W1 (resident, full array)
                pl.BlockSpec((1, H), lambda i: (0, 0)),             # b1
                pl.BlockSpec((H, H), lambda i: (0, 0)),             # W2 (resident)
                pl.BlockSpec((1, H), lambda i: (0, 0)),             # b2
                pl.BlockSpec((1, H), lambda i: (0, 0)),             # W3 row (resident)
                pl.BlockSpec(memory_space=pltpu.MemorySpace.SMEM),  # b3 scalar
            ],
            out_specs=pl.BlockSpec((1, tile_b), lambda i: (0, i)),  # lane-dense output
        ),
        compiler_params=pltpu.CompilerParams(
            dimension_semantics=("parallel",),   # shards grid steps across TCs on v7x
        ),
    )(state_p, w1, b1, w2, b2, w3_row, b3_s)

    return out[0, :B]                            # squeeze(-1) + drop batch padding


# ------------------------ deterministic parameter init ----------------------
def _orthogonal(key, shape, gain):
    """Orthogonal init a la nn.init.orthogonal_ (shape = (out, in)), returned
    transposed to (in, out) for the x @ W convention used in the kernel."""
    rows, cols = shape
    flat = jax.random.normal(key, (max(rows, cols), min(rows, cols)), jnp.float32)
    q, r = jnp.linalg.qr(flat)
    q = q * jnp.sign(jnp.diag(r))      # deterministic sign convention
    if rows < cols:
        q = q.T
    w = gain * q[:rows, :cols]         # (out, in), like PyTorch layer.weight
    return w.T                         # (in, out)


def init_critic_params(key, num_observations, fc_dim_critic):
    k1, k2, k3 = jax.random.split(key, 3)
    sqrt2 = float(jnp.sqrt(2.0))
    w1 = _orthogonal(k1, (fc_dim_critic, num_observations), sqrt2)   # (D_in, H)
    b1 = jnp.zeros((1, fc_dim_critic), jnp.float32)
    w2 = _orthogonal(k2, (fc_dim_critic, fc_dim_critic), sqrt2)      # (H, H)
    b2 = jnp.zeros((1, fc_dim_critic), jnp.float32)
    w3 = _orthogonal(k3, (1, fc_dim_critic), 1.0)                    # (H, 1)
    b3 = jnp.zeros((1, 1), jnp.float32)
    return w1, b1, w2, b2, w3, b3


# ----------------------------------- main ------------------------------------
if __name__ == "__main__":
    key = jax.random.PRNGKey(0)
    k_param, k_state = jax.random.split(key)

    num_observations = 17     # Walker2d-v4 observation dim
    fc_dim_critic = 128       # config.fc_dim_critic
    batch = 16

    w1, b1, w2, b2, w3, b3 = init_critic_params(k_param, num_observations, fc_dim_critic)

    def reference(s):
        h = jnp.tanh(s @ w1 + b1)
        h = jnp.tanh(h @ w2 + b2)
        return (h @ w3 + b3)[:, 0]

    # Small batch: single grid step, whole MLP in one kernel invocation.
    state = jax.random.normal(k_state, (batch, num_observations), jnp.float32)
    value = jax.block_until_ready(critic_forward(state, w1, b1, w2, b2, w3, b3))
    assert value.shape == (batch,)
    assert jnp.allclose(value, reference(state), atol=1e-4, rtol=1e-4)

    # Rollout-sized batch (config.max_step_size = 2048): one block on v5e/v6e,
    # two parallel 1024-row steps on v7x (auto-selected).
    big_state = jax.random.normal(
        jax.random.PRNGKey(1), (2048, num_observations), jnp.float32
    )
    big_value = jax.block_until_ready(critic_forward(big_state, w1, b1, w2, b2, w3, b3))
    assert big_value.shape == (2048,)
    assert jnp.allclose(big_value, reference(big_state), atol=1e-4, rtol=1e-4)

    # Forced multi-step grid: exercises the tiled / parallel path on every chip.
    tiled_value = jax.block_until_ready(
        critic_forward(big_state, w1, b1, w2, b2, w3, b3, tile_b=1024)
    )
    assert jnp.allclose(tiled_value, big_value, atol=1e-5, rtol=1e-5)

    # Non-multiple batch with a tiled grid: exercises batch-row padding + slice-off.
    odd_state = jax.random.normal(
        jax.random.PRNGKey(2), (1000, num_observations), jnp.float32
    )
    odd_value = jax.block_until_ready(
        critic_forward(odd_state, w1, b1, w2, b2, w3, b3, tile_b=256)
    )
    assert odd_value.shape == (1000,)
    assert jnp.allclose(odd_value, reference(odd_state), atol=1e-4, rtol=1e-4)

    print("KERNEL_OK")
</pallas_src>

<mosaic_0001>
module attributes {stable_mosaic.version = 11 : i64} {
  func.func @_critic_kernel(%arg0: i32, %arg1: memref<16x17xf32, #tpu.memory_space<vmem>>, %arg2: memref<17x128xf32, #tpu.memory_space<vmem>>, %arg3: memref<1x128xf32, #tpu.memory_space<vmem>>, %arg4: memref<128x128xf32, #tpu.memory_space<vmem>>, %arg5: memref<1x128xf32, #tpu.memory_space<vmem>>, %arg6: memref<1x128xf32, #tpu.memory_space<vmem>>, %arg7: memref<1xf32, #tpu.memory_space<smem>>, %arg8: memref<1x16xf32, #tpu.memory_space<vmem>>) attributes {dimension_semantics = [#tpu.dimension_semantics<parallel>], iteration_bounds = array<i64: 1>, scalar_prefetch = 0 : i64, scratch_operands = 0 : i64, tpu.core_type = #tpu.core_type<tc>, window_params = [{transform_indices = @transform_0, window_bounds = array<i64: 16, 17>}, {pipeline_mode = #tpu.pipeline_mode<synchronous>, transform_indices = @transform_1, window_bounds = array<i64: 17, 128>}, {pipeline_mode = #tpu.pipeline_mode<synchronous>, transform_indices = @transform_2, window_bounds = array<i64: 1, 128>}, {pipeline_mode = #tpu.pipeline_mode<synchronous>, transform_indices = @transform_3, window_bounds = array<i64: 128, 128>}, {pipeline_mode = #tpu.pipeline_mode<synchronous>, transform_indices = @transform_4, window_bounds = array<i64: 1, 128>}, {pipeline_mode = #tpu.pipeline_mode<synchronous>, transform_indices = @transform_5, window_bounds = array<i64: 1, 128>}, {transform_indices = @transform_6, window_bounds = array<i64: 1>}, {transform_indices = @transform_7, window_bounds = array<i64: 1, 16>}]} {
    %c0 = arith.constant 0 : index
    %c0_0 = arith.constant 0 : index
    %0 = vector.load %arg1[%c0, %c0_0] : memref<16x17xf32, #tpu.memory_space<vmem>>, vector<16x17xf32>
    %c0_1 = arith.constant 0 : index
    %c0_2 = arith.constant 0 : index
    %1 = vector.load %arg2[%c0_1, %c0_2] : memref<17x128xf32, #tpu.memory_space<vmem>>, vector<17x128xf32>
    %cst = arith.constant dense<0.000000e+00> : vector<16x128xf32>
    %2 = tpu.matmul %0, %1, %cst {dimension_numbers = #tpu.dot_dimension_numbers<[1], [0], [0], [1], [0, 0, 1, 1], [], []>} : vector<16x17xf32>, vector<17x128xf32>, vector<16x128xf32> -> vector<16x128xf32>
    %c0_3 = arith.constant 0 : index
    %c0_4 = arith.constant 0 : index
    %3 = vector.load %arg3[%c0_3, %c0_4] : memref<1x128xf32, #tpu.memory_space<vmem>>, vector<1x128xf32>
    %4 = vector.broadcast %3 : vector<1x128xf32> to vector<16x128xf32>
    %5 = arith.addf %2, %4 : vector<16x128xf32>
    %6 = math.tanh %5 : vector<16x128xf32>
    %c0_5 = arith.constant 0 : index
    %c0_6 = arith.constant 0 : index
    %7 = vector.load %arg4[%c0_5, %c0_6] : memref<128x128xf32, #tpu.memory_space<vmem>>, vector<128x128xf32>
    %cst_7 = arith.constant dense<0.000000e+00> : vector<16x128xf32>
    %8 = tpu.matmul %6, %7, %cst_7 {dimension_numbers = #tpu.dot_dimension_numbers<[1], [0], [0], [1], [0, 0, 1, 1], [], []>} : vector<16x128xf32>, vector<128x128xf32>, vector<16x128xf32> -> vector<16x128xf32>
    %c0_8 = arith.constant 0 : index
    %c0_9 = arith.constant 0 : index
    %9 = vector.load %arg5[%c0_8, %c0_9] : memref<1x128xf32, #tpu.memory_space<vmem>>, vector<1x128xf32>
    %10 = vector.broadcast %9 : vector<1x128xf32> to vector<16x128xf32>
    %11 = arith.addf %8, %10 : vector<16x128xf32>
    %12 = math.tanh %11 : vector<16x128xf32>
    %c0_10 = arith.constant 0 : index
    %c0_11 = arith.constant 0 : index
    %13 = vector.load %arg6[%c0_10, %c0_11] : memref<1x128xf32, #tpu.memory_space<vmem>>, vector<1x128xf32>
    %14 = vector.broadcast %13 : vector<1x128xf32> to vector<16x128xf32>
    %15 = arith.mulf %12, %14 : vector<16x128xf32>
    %cst_12 = arith.constant dense<0.000000e+00> : vector<16xf32>
    %16 = vector.multi_reduction <add>, %15, %cst_12 [1] : vector<16x128xf32> to vector<16xf32>
    %c0_13 = arith.constant 0 : index
    %17 = memref.load %arg7[%c0_13] : memref<1xf32, #tpu.memory_space<smem>>
    %18 = vector.broadcast %17 : f32 to vector<16xf32>
    %19 = arith.addf %16, %18 : vector<16xf32>
    %20 = vector.shape_cast %19 : vector<16xf32> to vector<1x16xf32>
    %c0_14 = arith.constant 0 : index
    %c0_15 = arith.constant 0 : index
    %21 = vector.load %arg8[%c0_14, %c0_15] : memref<1x16xf32, #tpu.memory_space<vmem>>, vector<1x16xf32>
    tpu.vector_store %arg8[%c0_14, %c0_15], %20 {strides = array<i32>} : memref<1x16xf32, #tpu.memory_space<vmem>>, vector<1x16xf32>,
    return
  }
  func.func @transform_0(%arg0: i32) -> (i32, i32) {
    %c0_i32 = arith.constant 0 : i32
    %c0_i32_0 = arith.constant 0 : i32
    return %arg0, %c0_i32 : i32, i32
  }
  func.func @transform_1(%arg0: i32) -> (i32, i32) {
    %c0_i32 = arith.constant 0 : i32
    %c0_i32_0 = arith.constant 0 : i32
    %c0_i32_1 = arith.constant 0 : i32
    return %c0_i32, %c0_i32_0 : i32, i32
  }
  func.func @transform_2(%arg0: i32) -> (i32, i32) {
    %c0_i32 = arith.constant 0 : i32
    %c0_i32_0 = arith.constant 0 : i32
    %c0_i32_1 = arith.constant 0 : i32
    return %c0_i32, %c0_i32_0 : i32, i32
  }
  func.func @transform_3(%arg0: i32) -> (i32, i32) {
    %c0_i32 = arith.constant 0 : i32
    %c0_i32_0 = arith.constant 0 : i32
    %c0_i32_1 = arith.constant 0 : i32
    return %c0_i32, %c0_i32_0 : i32, i32
  }
  func.func @transform_4(%arg0: i32) -> (i32, i32) {
    %c0_i32 = arith.constant 0 : i32
    %c0_i32_0 = arith.constant 0 : i32
    %c0_i32_1 = arith.constant 0 : i32
    return %c0_i32, %c0_i32_0 : i32, i32
  }
  func.func @transform_5(%arg0: i32) -> (i32, i32) {
    %c0_i32 = arith.constant 0 : i32
    %c0_i32_0 = arith.constant 0 : i32
    %c0_i32_1 = arith.constant 0 : i32
    return %c0_i32, %c0_i32_0 : i32, i32
  }
  func.func @transform_6(%arg0: i32) -> i32 {
    %c0_i32 = arith.constant 0 : i32
    %c0_i32_0 = arith.constant 0 : i32
    return %c0_i32 : i32
  }
  func.func @transform_7(%arg0: i32) -> (i32, i32) {
    %c0_i32 = arith.constant 0 : i32
    %c0_i32_0 = arith.constant 0 : i32
    return %c0_i32, %arg0 : i32, i32
  }
}

</mosaic_0001>

<bundles_post_ra>
// kernel: tpu_custom_call.1
= control target key start
LH: loop header
LB: loop body
LE: loop exit
PB: predicated region body
PF: predicated region fallthrough
CT: control target
= control target key end

     0   :  { %13 = vsyncpa [#allocation4], 0  ;;  %s419_s0 = inlined_call_operand.hbm [shape: f32[16,17], index: 0, kind: input, shape index: {}]   ;;  %s420_s1 = inlined_call_operand.hbm [shape: f32[17,128], index: 1, kind: input, shape index: {}]   ;;  %s421_s2 = inlined_call_operand.vmem [shape: f32[1,128], index: 2, kind: input, shape index: {}]   ;;  %s422_s3 = inlined_call_operand.hbm [shape: f32[128,128], index: 3, kind: input, shape index: {}]   ;;  %s423_s4 = inlined_call_operand.vmem [shape: f32[1,128], index: 4, kind: input, shape index: {}]   ;;  %s424_s5 = inlined_call_operand.vmem [shape: f32[1,128], index: 5, kind: input, shape index: {}]   ;;  %s425_s6 = inlined_call_operand.<no memory space> [shape: f32[1], index: 6, kind: input, shape index: {}]   ;;  %s426_s7 = inlined_call_operand.hbm [shape: f32[1,16], index: 7, kind: output, shape index: {}]  }
   0x1   :  { %14 = vsyncpa [#allocation7], 0 }
   0x2   :  { %15 = vsyncpa [#allocation5], 0  ;;  %s33_s26 = sshll.u32 %s420_s1, 4  ;;  %s347_s27 = smov [#allocation6]   ;;  %s34_s26 = int_to_ptr.hbm [resolvable:$true] %s33_s26 }
   0x3   :  { %s35_s28 = sshll.u32 %s347_s27, 4  ;;  %s20_s8 = sshll.u32 %s419_s0, 4  ;;  %s36_s28 = int_to_ptr.vmem [resolvable:$true] %s35_s28  ;;  %s21_s8 = int_to_ptr.hbm [resolvable:$true] %s20_s8 }
   0x4   :  { %s348_s9 = smov 128   ;;  %s349_s10 = smov 8  }
   0x5   :  { %41 = dma.hbm_to_vmem [thread:$0]  %s34_s26, 384, %s36_s28, [#allocation7], %s348_s9, %s348_s9, %s349_s10  }
   0x6   :  { %s350_s11 = smov [#allocation3]   ;;  %s48_s15 = sshll.u32 %s422_s3, 4  ;;  %s49_s15 = int_to_ptr.hbm [resolvable:$true] %s48_s15 }
   0x7   :  { %s22_s12 = sshll.u32 %s350_s11, 4  ;;  %s351_s1 = smov [#allocation8]   ;;  %s23_s12 = int_to_ptr.vmem [resolvable:$true] %s22_s12 }
   0x8   :  { %28 = dma.hbm_to_vmem [thread:$0]  %s21_s8, 256, %s23_s12, [#allocation4], %s348_s9, %s348_s9, %s349_s10  }
   0x9   :  { %s50_s16 = sshll.u32 %s351_s1, 4  ;;  %s51_s16 = int_to_ptr.vmem [resolvable:$true] %s50_s16 }
   0xa   :  { %56 = dma.hbm_to_vmem [thread:$0]  %s49_s15, 2048, %s51_s16, [#allocation7], %s348_s9, %s348_s9, %s349_s10  }
   0xb   :  { %341 = dma.done.wait [#allocation4], 256  }
   0xc   :  { %342 = vsyncadd [#allocation4], 4294967040 }
   0xd   :  { %343 = dma.done.wait [#allocation7], 2432  }
   0xe   :  { %344 = vsyncadd [#allocation7], 4294964864  ;;  %vm91_vm0 = vcmask 1040384   ;;  %v79_v0 = vld [vmem:[#allocation6 + $0x10] sm:$0x1]  ;;  %v78_v1 = vld [vmem:[#allocation6 + $0x8] sm:$0xff]  ;;  %v181_v39 = vlaneseq  ;;  %v176_v40 = vstv %s425_s6 }
   0xf   :  { %209 = vmatpush.msk.msra.mxu0 %vm91_vm0, %v79_v0  ;;  %v135_v2 = vld [vmem:[#allocation8 + $0x78] sm:$0xff]  ;;  %v77_v3 = vld [vmem:[#allocation6] sm:$0xff]  ;;  %v134_v4 = vld [vmem:[#allocation8 + $0x70] sm:$0xff]  ;;  %vm84_vm1 = vcmask 138240   ;;  %s198_s24 = sshll.u32 %s426_s7, 4  ;;  %vm186_vm2 = vcmask 130112   ;;  %s199_s24 = int_to_ptr.hbm [resolvable:$true] %s198_s24 }
  0x10   :  { %140 = vmatpush.msra.mxu1 %v135_v2  ;;  %212 = vmatpush.msra.mxu2 %v135_v2  ;;  %v75_v5 = vld [vmem:[#allocation3] sm:$0xff]  ;;  %v133_v6 = vld [vmem:[#allocation8 + $0x68] sm:$0xff]  ;;  %v132_v7 = vld [vmem:[#allocation8 + $0x60] sm:$0xff]  ;;  %v182_v41 = vand.u32 127, %v181_v39  ;;  %vm189_vm3 = vcmask 122880  }
  0x11   :  { %109 = vmatpush.msra.mxu0 %v78_v1  ;;  %v131_v8 = vld [vmem:[#allocation8 + $0x58] sm:$0xff]  ;;  %v130_v9 = vld [vmem:[#allocation8 + $0x50] sm:$0xff]  ;;  %v76_v10 = vld [vmem:[#allocation3 + $0x8] sm:$0xff] }
  0x12   :  { %141 = vmatpush.msra.mxu1 %v134_v4  ;;  %213 = vmatpush.msra.mxu2 %v134_v4  ;;  %v129_v11 = vld [vmem:[#allocation8 + $0x48] sm:$0xff]  ;;  %v128_v12 = vld [vmem:[#allocation8 + $0x40] sm:$0xff]  ;;  %v127_v13 = vld [vmem:[#allocation8 + $0x38] sm:$0xff]  ;;  %v184_v43 = vadd.s32 4294967288, %v182_v41 }
  0x13   :  { %110 = vmatpush.msra.mxu0 %v77_v3  ;;  %v126_v14 = vld [vmem:[#allocation8 + $0x30] sm:$0xff]  ;;  %v125_v15 = vld [vmem:[#allocation8 + $0x28] sm:$0xff]  ;;  %v124_v16 = vld [vmem:[#allocation8 + $0x20] sm:$0xff] }
  0x14   :  { %210 = vmatmul.msk.f32.vlgmr.msra.gmra.mxu0 %vm84_vm1, %v75_v5  ;;  %142 = vmatpush.msra.mxu1 %v133_v6  ;;  %v123_v17 = vld [vmem:[#allocation8 + $0x18] sm:$0xff]  ;;  %v122_v18 = vld [vmem:[#allocation8 + $0x10] sm:$0xff]  ;;  %v121_v19 = vld [vmem:[#allocation8 + $0x8] sm:$0xff] }
  0x15   :  { %214 = vmatpush.msra.mxu2 %v133_v6  ;;  %v120_v20 = vld [vmem:[#allocation8] sm:$0xff]  ;;  %v234_v21 = vld [vmem:[%s421_s2] ss:$0 sm:$0xff] }
  0x16   :  { %143 = vmatpush.msra.mxu1 %v132_v7  ;;  %v235_v28 = vld [vmem:[%s423_s4] ss:$0 sm:$0xff] }
  0x17   :  { %215 = vmatpush.msra.mxu2 %v132_v7  ;;  %v236_v31 = vld [vmem:[%s424_s5] ss:$0 sm:$0xff]  ;;  %s352_s5 = smov [#allocation9]  }
  0x18   :  { %144 = vmatpush.msra.mxu1 %v131_v8  ;;  %s196_s21 = sshll.u32 %s352_s5, 4  ;;  %s197_s21 = int_to_ptr.vmem [resolvable:$true] %s196_s21 }
  0x19   :  { %216 = vmatpush.msra.mxu2 %v131_v8 }
  0x1a   :  { %145 = vmatpush.msra.mxu1 %v130_v9 }
  0x1b   :  { %217 = vmatpush.msra.mxu2 %v130_v9 }
  0x1c   :  { %211 = vmatmul.msk.f32.gmra.mxu0 %vm84_vm1, %v76_v10  ;;  %146 = vmatpush.msra.mxu1 %v129_v11 }
  0x1d   :  { %218 = vmatpush.msra.mxu2 %v129_v11 }
  0x1e   :  { %147 = vmatpush.msra.mxu1 %v128_v12 }
  0x1f   :  { %219 = vmatpush.msra.mxu2 %v128_v12 }
  0x20   :  { %148 = vmatpush.msra.mxu1 %v127_v13 }
  0x21   :  { %220 = vmatpush.msra.mxu2 %v127_v13 }
  0x22   :  { %149 = vmatpush.msra.mxu1 %v126_v14 }
  0x23   :  { %221 = vmatpush.msra.mxu2 %v126_v14 }
  0x24   :  { %150 = vmatpush.msra.mxu1 %v125_v15 }
  0x25   :  { %222 = vmatpush.msra.mxu2 %v125_v15 }
  0x26   :  { %151 = vmatpush.msra.mxu1 %v124_v16 }
  0x27   :  { %223 = vmatpush.msra.mxu2 %v124_v16 }
  0x28   :  { %152 = vmatpush.msra.mxu1 %v123_v17 }
  0x29   :  { %224 = vmatpush.msra.mxu2 %v123_v17 }
  0x2a   :  { %153 = vmatpush.msra.mxu1 %v122_v18 }
  0x2b   :  { %225 = vmatpush.msra.mxu2 %v122_v18 }
  0x2c   :  { %154 = vmatpush.msra.mxu1 %v121_v19 }
  0x2d   :  { %226 = vmatpush.msra.mxu2 %v121_v19 }
  0x2e   :  { %155 = vmatpush.msra.mxu1 %v120_v20 }
  0x2f   :  { %227 = vmatpush.msra.mxu2 %v120_v20 }
  0x91   :  { %v112_v22 = vpop.f32.mrf.mxu0 }
  0x92   :  { %v113_v23 = vadd.f32 %v234_v21, %v112_v22 }
  0x94   :  { %237 = vtanh.f32 %v113_v23 }
  0x99   :  { %v115_v24 = vpop.f32.mrf.mxu0 }
  0x9a   :  { %v238_v25 = vpop.eup %237  ;;  %v116_v26 = vadd.f32 %v234_v21, %v115_v24 }
  0x9b   :  { %156 = vmatmul.f32.vlgmr.msra.gmra.mxu1 %v238_v25 }
  0x9c   :  { %239 = vtanh.f32 %v116_v26 }
  0xa2   :  { %v240_v27 = vpop.eup %239 }
  0xa3   :  { %159 = vmatmul.f32.vlgmr.msra.gmra.mxu2 %v240_v27 }
 0x118   :  { %v157_v29 = vpop.f32.mrf.mxu1 }
 0x119   :  { %v158_v30 = vadd.f32 %v235_v28, %v157_v29 }
 0x11b   :  { %241 = vtanh.f32 %v158_v30 }
 0x121   :  { %v242_v32 = vpop.eup %241 }
 0x122   :  { %v169_v33 = vmul.f32 %v242_v32, %v236_v31 }
 0x124   :  { %171 = vadd.xlane.f32.xlu0 %v169_v33 }
 0x126   :  { %v160_v34 = vpop.f32.mrf.mxu2 }
 0x127   :  { %v161_v35 = vadd.f32 %v235_v28, %v160_v34 }
 0x129   :  { %243 = vtanh.f32 %v161_v35 }
 0x12f   :  { %v244_v36 = vpop.eup %243 }
 0x130   :  { %v170_v37 = vmul.f32 %v244_v36, %v236_v31 }
 0x132   :  { %173 = vadd.xlane.f32.xlu0 %v170_v37 }
 0x197   :  { %v172_v38 = vpop.xlane.xlu0 %171 }
 0x198   :  { %v177_v42 = vadd.f32 %v176_v40, %v172_v38 }
 0x19a   :  { %v183_v46 = vperm.slane %v177_v42, %v182_v41 }
 0x1a5   :  { %v174_v44 = vpop.xlane.xlu0 %173 }
 0x1a6   :  { %v178_v45 = vadd.f32 %v176_v40, %v174_v44 }
 0x1a8   :  { %v185_v47 = vperm.slane %v178_v45, %v184_v43 }
 0x1aa   :  { %v187_v48 = vsel %vm186_vm2, %v185_v47, %v183_v46 }
 0x1ab   :  { %190 = vst.msk [vmem:[#allocation9] sm:$0x1] %vm189_vm3, %v187_v48 }
 0x1ac   :  { %201 = dma.vmem_to_hbm [thread:$0]  %s197_s21, 16, %s199_s24, [#allocation5]  }
 0x1ad   :  { %345 = dma.done.wait [#allocation5], 16  }
 0x1ae   :  { %346 = vsyncadd [#allocation5], 4294967280 }
 0x1af   :  { %206 = vsyncpa [#allocation4], 1 }
 0x1b0   :  { %207 = vsyncpa [#allocation7], 1 }
 0x1b1   :  { %208 = vsyncpa [#allocation5], 1 }

</bundles_post_ra>
